<compile_context>
chip_gen: v7x
topology: tpu7x:2x2x1
jax: 0.10.0
libtpu: 0.0.40
codegen_flags: <defaults>
</compile_context>

<pallas_src>
import numpy as np
import jax
import jax.numpy as jnp
from jax.experimental import pallas as pl
from jax.experimental.pallas import tpu as pltpu


_X_BLOCK_BUDGET = 4 * 1024 * 1024    # bytes of x per block; in+out double-buffered ~ 16 MiB VMEM
_SPLIT_THRESHOLD = 2 * 1024 * 1024   # above this, force >= 2 grid steps (v7x has 2 TensorCores)
_VMEM_LIMIT = 48 * 1024 * 1024       # raise scoped VMEM limit (v5e default is only 16 MiB)


def _drop_path_kernel(x_ref, m_ref, o_ref):
    # One broadcast VPU multiply per vreg.  Multiply in f32 (mask is f32 so the
    # 1/keep_prob scale never gets quantized); cast only at the store.
    o_ref[...] = (x_ref[...].astype(jnp.float32) * m_ref[...]).astype(o_ref.dtype)


def _round_up(v, m):
    return ((v + m - 1) // m) * m


def _sublane(itemsize):
    # Sublane packing granularity: f32 -> 8 rows, bf16 -> 16, int8/fp8 -> 32.
    return max(8, 32 // max(1, itemsize))


def _choose_tiles_3d(n, rows, itemsize, budget):
    """Tile sizes for the (n, rows, 128) lane-exact layout."""
    sub = _sublane(itemsize)
    row_bytes = 128 * itemsize
    max_tr = max(sub, ((budget // row_bytes) // sub) * sub)
    if rows <= max_tr:
        tr = rows                                            # == full dim -> always legal
        bt = max(1, min(n, budget // max(1, rows * row_bytes)))
    else:
        tr = max_tr                                          # multiple of sublane granularity
        bt = 1
    # Guarantee >= 2 grid steps for big tensors so v7x's 2nd TC gets work.
    total = n * rows * row_bytes
    if total > _SPLIT_THRESHOLD and pl.cdiv(n, bt) * pl.cdiv(rows, tr) < 2:
        if n >= 2:
            bt = pl.cdiv(n, 2)        # 3rd-from-last dim: no alignment constraint
        elif rows > sub:
            tr = min(rows, _round_up(pl.cdiv(rows, 2), sub))
    return bt, tr


def _choose_bt_2d(n, f, itemsize, budget):
    """Batch tile for the (n, f) full-last-dim layout (features % 128 != 0)."""
    sub = _sublane(itemsize)
    row_bytes = f * itemsize
    bt = max(1, budget // max(1, row_bytes))
    if bt >= n:
        bt = n                                               # == full dim -> legal
    else:
        bt = max(sub, (bt // sub) * sub)                     # 2nd-minor dim must align
    total = n * row_bytes
    if total > _SPLIT_THRESHOLD and pl.cdiv(n, bt) < 2 and n > sub:
        bt = min(n, _round_up(pl.cdiv(n, 2), sub))
    # TODO(synk): for huge f not a multiple of 128, split into a 128-aligned main
    # pallas_call plus a small remainder call instead of one (bt, f) block.
    return bt


def lab_drop_path(x, drop_prob: float = 0.0, training: bool = False,
                  scale_by_keep: bool = True, key=None,
                  *, block_budget_bytes: int = _X_BLOCK_BUDGET):
    """JAX/Pallas forward of the PyTorch lab_drop_path (per-sample stochastic depth)."""
    if drop_prob == 0.0 or not training:
        return x
    if key is None:
        raise ValueError(
            "lab_drop_path: an explicit jax.random key is required when training with "
            "drop_prob > 0 (a fixed default key would drop the same samples every call).")

    keep_prob = 1.0 - float(drop_prob)
    n = x.shape[0]
    orig_shape = x.shape
    itemsize = jnp.dtype(x.dtype).itemsize

    # Per-sample keep mask, same recipe as the torch code:
    #   floor(keep_prob + U[0,1)) in {0,1}, optionally scaled by 1/keep_prob.
    # Kept in float32; the kernel multiplies in f32 and casts only at the store.
    # (Uses JAX's RNG, so it will not bit-match the PyTorch RNG stream.)
    u = jax.random.uniform(key, (n,), dtype=jnp.float32)
    mask = jnp.floor(keep_prob + u)
    if scale_by_keep and keep_prob > 0.0:
        mask = mask / keep_prob

    flat = x.reshape(n, -1)
    f = flat.shape[1]

    if f % 128 == 0:
        # Lane-exact zero-copy reshape to (n, rows, 128).
        rows = f // 128
        x3 = flat.reshape(n, rows, 128)
        mask3 = mask.reshape(n, 1, 1)
        bt, tr = _choose_tiles_3d(n, rows, itemsize, block_budget_bytes)
        grid = (pl.cdiv(n, bt), pl.cdiv(rows, tr))
        out = pl.pallas_call(
            _drop_path_kernel,
            out_shape=jax.ShapeDtypeStruct(x3.shape, x3.dtype),
            grid=grid,
            in_specs=[
                pl.BlockSpec((bt, tr, 128), lambda b, r: (b, r, 0)),
                pl.BlockSpec((bt, 1, 1), lambda b, r: (b, 0, 0)),
            ],
            out_specs=pl.BlockSpec((bt, tr, 128), lambda b, r: (b, r, 0)),
            compiler_params=pltpu.CompilerParams(
                dimension_semantics=("parallel", "parallel"),
                vmem_limit_bytes=_VMEM_LIMIT,
            ),
        )(x3, mask3)
    else:
        # Odd feature count: keep 2-D and give the BlockSpec the full last dim.
        # No pad / slice passes; Pallas masks the lane edge internally.
        mask2 = mask.reshape(n, 1)
        bt = _choose_bt_2d(n, f, itemsize, block_budget_bytes)
        grid = (pl.cdiv(n, bt),)
        out = pl.pallas_call(
            _drop_path_kernel,
            out_shape=jax.ShapeDtypeStruct(flat.shape, flat.dtype),
            grid=grid,
            in_specs=[
                pl.BlockSpec((bt, f), lambda b: (b, 0)),
                pl.BlockSpec((bt, 1), lambda b: (b, 0)),
            ],
            out_specs=pl.BlockSpec((bt, f), lambda b: (b, 0)),
            compiler_params=pltpu.CompilerParams(
                dimension_semantics=("parallel",),
                vmem_limit_bytes=_VMEM_LIMIT,
            ),
        )(flat, mask2)

    return out.reshape(orig_shape)


class LabDropPath:
    """DropPath wrapper (JAX). No parameters; drop_prob / scale_by_keep are config."""

    def __init__(self, drop_prob: float = 0.0, scale_by_keep: bool = True):
        self.drop_prob = drop_prob
        self.scale_by_keep = scale_by_keep

    def __call__(self, x, *, training: bool = False, key=None, **kwargs):
        return lab_drop_path(x, self.drop_prob, training, self.scale_by_keep, key, **kwargs)


def _check_drop_path(xn, yn, drop_prob, rtol=1e-5, atol=1e-5):
    keep_prob = 1.0 - drop_prob
    for b in range(xn.shape[0]):
        zero_ok = np.allclose(yn[b], 0.0, atol=atol)
        keep_ok = np.allclose(yn[b], xn[b] / keep_prob, rtol=rtol, atol=atol)
        assert zero_ok or keep_ok, f"sample {b}: not a valid drop-path output"


if __name__ == "__main__":
    root = jax.random.PRNGKey(0)
    k_x1, k_x2, k_x3, k_x4, k_d1, k_d2, k_d3, k_d4 = jax.random.split(root, 8)

    module = LabDropPath(drop_prob=0.5, scale_by_keep=True)

    # Case 1: NCHW input, features = 4*16*16 = 1024 (multiple of 128) -> 3-D path.
    x1 = jax.random.normal(k_x1, (2, 4, 16, 16), dtype=jnp.float32)
    y_eval = module(x1, training=False)
    jax.block_until_ready(y_eval)
    assert np.allclose(np.asarray(y_eval), np.asarray(x1))

    y1 = module(x1, training=True, key=k_d1)
    jax.block_until_ready(y1)
    assert y1.shape == x1.shape and y1.dtype == x1.dtype
    _check_drop_path(np.asarray(x1), np.asarray(y1), module.drop_prob)

    # Case 2: odd feature count (5*7*9 = 315, not a multiple of 128), n = 3, bf16.
    x2 = jax.random.normal(k_x2, (3, 5, 7, 9), dtype=jnp.bfloat16)
    y2 = module(x2, training=True, key=k_d2)
    jax.block_until_ready(y2)
    assert y2.shape == x2.shape and y2.dtype == x2.dtype
    _check_drop_path(np.asarray(x2.astype(jnp.float32)),
                     np.asarray(y2.astype(jnp.float32)), module.drop_prob,
                     rtol=1e-2, atol=1e-2)

    # Case 3: partial row tiles (rows = 20, tr = 16 via a tiny block budget).
    x3 = jax.random.normal(k_x3, (1, 20 * 128), dtype=jnp.float32)
    y3 = module(x3, training=True, key=k_d3, block_budget_bytes=8192)
    jax.block_until_ready(y3)
    _check_drop_path(np.asarray(x3), np.asarray(y3), module.drop_prob)

    # Case 4: partial batch tiles (n = 3, bt = 2 via a tiny block budget).
    x4 = jax.random.normal(k_x4, (3, 1024), dtype=jnp.float32)
    y4 = module(x4, training=True, key=k_d4, block_budget_bytes=8192)
    jax.block_until_ready(y4)
    _check_drop_path(np.asarray(x4), np.asarray(y4), module.drop_prob)

    print("KERNEL_OK")
</pallas_src>

<mosaic_0001>
module attributes {stable_mosaic.version = 11 : i64} {
  func.func @_drop_path_kernel(%arg0: i32, %arg1: i32, %arg2: memref<2x8x128xf32, #tpu.memory_space<vmem>>, %arg3: memref<2x1x1xf32, #tpu.memory_space<vmem>>, %arg4: memref<2x8x128xf32, #tpu.memory_space<vmem>>) attributes {dimension_semantics = [#tpu.dimension_semantics<parallel>, #tpu.dimension_semantics<parallel>], iteration_bounds = array<i64: 1, 1>, scalar_prefetch = 0 : i64, scratch_operands = 0 : i64, tpu.core_type = #tpu.core_type<tc>, window_params = [{transform_indices = @transform_0, window_bounds = array<i64: 2, 8, 128>}, {transform_indices = @transform_1, window_bounds = array<i64: 2, 1, 1>}, {transform_indices = @transform_2, window_bounds = array<i64: 2, 8, 128>}]} {
    %c0 = arith.constant 0 : index
    %c0_0 = arith.constant 0 : index
    %c0_1 = arith.constant 0 : index
    %0 = vector.load %arg2[%c0, %c0_0, %c0_1] : memref<2x8x128xf32, #tpu.memory_space<vmem>>, vector<2x8x128xf32>
    %c0_2 = arith.constant 0 : index
    %c0_3 = arith.constant 0 : index
    %c0_4 = arith.constant 0 : index
    %1 = vector.load %arg3[%c0_2, %c0_3, %c0_4] : memref<2x1x1xf32, #tpu.memory_space<vmem>>, vector<2x1x1xf32>
    %2 = vector.broadcast %1 : vector<2x1x1xf32> to vector<2x8x128xf32>
    %3 = arith.mulf %0, %2 : vector<2x8x128xf32>
    %c0_5 = arith.constant 0 : index
    %c0_6 = arith.constant 0 : index
    %c0_7 = arith.constant 0 : index
    %4 = vector.load %arg4[%c0_5, %c0_6, %c0_7] : memref<2x8x128xf32, #tpu.memory_space<vmem>>, vector<2x8x128xf32>
    tpu.vector_store %arg4[%c0_5, %c0_6, %c0_7], %3 {strides = array<i32>} : memref<2x8x128xf32, #tpu.memory_space<vmem>>, vector<2x8x128xf32>,
    return
  }
  func.func @transform_0(%arg0: i32, %arg1: i32) -> (i32, i32, i32) {
    %c0_i32 = arith.constant 0 : i32
    %c0_i32_0 = arith.constant 0 : i32
    return %arg0, %arg1, %c0_i32 : i32, i32, i32
  }
  func.func @transform_1(%arg0: i32, %arg1: i32) -> (i32, i32, i32) {
    %c0_i32 = arith.constant 0 : i32
    %c0_i32_0 = arith.constant 0 : i32
    %c0_i32_1 = arith.constant 0 : i32
    return %arg0, %c0_i32, %c0_i32_0 : i32, i32, i32
  }
  func.func @transform_2(%arg0: i32, %arg1: i32) -> (i32, i32, i32) {
    %c0_i32 = arith.constant 0 : i32
    %c0_i32_0 = arith.constant 0 : i32
    return %arg0, %arg1, %c0_i32 : i32, i32, i32
  }
}

</mosaic_0001>

<bundles_post_ra>
// kernel: tpu_custom_call.1
= control target key start
LH: loop header
LB: loop body
LE: loop exit
PB: predicated region body
PF: predicated region fallthrough
CT: control target
= control target key end

     0   :  { %7 = vsyncpa [#allocation3], 0  ;;  %s181_s0 = inlined_call_operand.hbm [shape: f32[2,8,128], index: 0, kind: input, shape index: {}]   ;;  %s182_s1 = inlined_call_operand.vmem [shape: f32[2,1,1], index: 1, kind: input, shape index: {}]   ;;  %s183_s2 = inlined_call_operand.hbm [shape: f32[2,8,128], index: 2, kind: output, shape index: {}]  }
   0x1   :  { %8 = vsyncpa [#allocation4], 0  ;;  %s125_s9 = smov [#allocation2]   ;;  %s77_s13 = scalar_lea.hbm %s181_s0, 256 }
   0x2   :  { %s14_s10 = sshll.u32 %s125_s9, 4  ;;  %p78_p0 = scmp.ne.s32.totalorder %s181_s0, %s77_s13  ;;  %s15_s10 = int_to_ptr.vmem [resolvable:$true] %s14_s10 }
   0x3   :  { %p81_p1 = scmp.lt.u32.totalorder %s77_s13, %s181_s0 }
   0x5   :  { %p83_p2 = pnand %p81_p1, %p78_p0 }
   0x7   :  { %86 = shalt.err (!%p83_p2)
}
   0x8   :  { %s87_s18 = scalar_lea.vmem %s15_s10, 256  ;;  %p92_p4 = scmp.lt.s32.totalorder %s15_s10, %s15_s10 }
   0x9   :  { %p88_p3 = scmp.ne.s32.totalorder %s15_s10, %s87_s18  ;;  %p93_p5 = scmp.lt.s32.totalorder %s87_s18, %s87_s18 }
   0xb   :  { %p94_p6 = por %p93_p5, %p92_p4 }
   0xd   :  { %p95_p7 = pnand %p94_p6, %p88_p3 }
   0xf   :  { %98 = shalt.err (!%p95_p7)
}
  0x10   :  { %s126_s19 = smov 128   ;;  %s127_s20 = smov 8  }
  0x11   :  { %20 = dma.hbm_to_vmem [thread:$0]  %s181_s0, 256, %s15_s10, [#allocation3], %s126_s19, %s126_s19, %s127_s20  }
  0x12   :  { %121 = dma.done.wait [#allocation3], 256  }
  0x13   :  { %122 = vsyncadd [#allocation3], 4294967040  ;;  %v128_v0 = vmov 0   ;;  %v69_v1 = vld [vmem:[%s182_s1] ss:$0 sm:$0xff]  ;;  %v27_v6 = vld [vmem:[#allocation2 + $0x8] sm:$0xff] }
  0x14   :  { %76 = vset.pattern.permute.xlu0 %v128_v0  ;;  %v70_v2 = vld [vmem:[%s182_s1 + $0x1] ss:$0 sm:$0xff]  ;;  %s129_s27 = smov [#allocation5]  }
  0x15   :  { %41 = vperm.xlu0 %76, %v69_v1   ;;  %v26_v3 = vld [vmem:[#allocation2] sm:$0xff]  ;;  %s57_s0 = sshll.u32 %s129_s27, 4  ;;  %s58_s0 = int_to_ptr.vmem [resolvable:$true] %s57_s0 }
  0x16   :  { %s99_s28 = scalar_lea.vmem %s58_s0, 256  ;;  %p104_p9 = scmp.lt.s32.totalorder %s58_s0, %s58_s0 }
  0x17   :  { %p100_p8 = scmp.ne.s32.totalorder %s58_s0, %s99_s28  ;;  %p105_p10 = scmp.lt.s32.totalorder %s99_s28, %s99_s28 }
  0x19   :  { %45 = vperm.xlu0 %76, %v70_v2   ;;  %p106_p11 = por %p105_p10, %p104_p9 }
  0x1b   :  { %p107_p12 = pnand %p106_p11, %p100_p8 }
  0x94   :  { %v42_v4 = vpop.permute.xlu0 %41 }
  0x95   :  { %v48_v5 = vmul.f32 %v42_v4, %v26_v3 }
  0x97   :  { %50 = vst [vmem:[#allocation5] sm:$0xff] %v48_v5 }
  0x98   :  { %v46_v7 = vpop.permute.xlu0 %45 }
  0x99   :  { %v49_v8 = vmul.f32 %v46_v7, %v27_v6 }
  0x9b   :  { %51 = vst [vmem:[#allocation5 + $0x8] sm:$0xff] %v49_v8 }
  0x9c   :  { %110 = shalt.err (!%p107_p12)
}
  0x9d   :  { %s111_s30 = scalar_lea.hbm %s183_s2, 256 }
  0x9e   :  { %p112_p13 = scmp.ne.s32.totalorder %s183_s2, %s111_s30  ;;  %p115_p0 = scmp.lt.u32.totalorder %s111_s30, %s183_s2 }
  0xa0   :  { %p117_p1 = pnand %p115_p0, %p112_p13 }
  0xa2   :  { %120 = shalt.err (!%p117_p1)
}
  0xa3   :  { %63 = dma.vmem_to_hbm [thread:$0]  %s58_s0, 256, %s183_s2, [#allocation4], %s126_s19, %s126_s19, %s127_s20  }
  0xa4   :  { %123 = dma.done.wait [#allocation4], 256  }
  0xa5   :  { %124 = vsyncadd [#allocation4], 4294967040 }
  0xa6   :  { %67 = vsyncpa [#allocation3], 1 }
  0xa7   :  { %68 = vsyncpa [#allocation4], 1 }

</bundles_post_ra>
